<compile_context>
chip_gen: v6e
topology: v6e:2x2x1
jax: 0.10.0
libtpu: 0.0.40
codegen_flags: <defaults>
</compile_context>

<pallas_src>
import math

import numpy as np

import jax
import jax.numpy as jnp
from jax.experimental import pallas as pl
from jax.experimental.pallas import tpu as pltpu

MATH_PI = math.pi

# ---- module config (AngleFeature defaults; num_bins shrunk for the demo) ----
SR = 16000
VELOCITY = 340.0
R_ARRAY = 0.0425
AF_INDEX = "1,0;2,0;3,0;4,0;5,0;6,0"
_PAIRS = [tuple(map(int, s.split(","))) for s in AF_INDEX.split(";")]
INDEX_L = [t[0] for t in _PAIRS]
INDEX_R = [t[1] for t in _PAIRS]
NUM_PAIRS = len(_PAIRS)                 # 6
NUM_MICS = 7                            # princeton array: 1 center + 6 ring mics

# Tiling knobs
_F_BLK_TARGET = 64                       # max frequency sublanes per grid block
_VALUE_BYTES_TARGET = 32 * 1024          # one (f_blk, chunk) f32 value ~ 8 vregs
_VMEM_PIPELINE_BUDGET = 36 * 1024 * 1024 # double-buffered in+out tiles
_VMEM_MARGIN = 4 * 1024 * 1024           # compiler temporaries / dif vectors


# ---------------------------------------------------------------------------
# Fast bounded-range cosine (pure VPU work).
# cos() is NOT a native EUP op on TPU: jnp.cos lowers to a long generic-range
# polynomial on the VALU, and 6 cosines per output element is what saturates
# the binding slot here (there is no MXU work).
#
# Precondition (documented, holds for this module): |x| <= ~8*pi, because
# phases are wrapped to [-pi, pi] (|ipd| <= 2*pi) and |dif| <= 2R/v * pi*sr
# ~= 4*pi, so |k| <= 3 and the single-step reduction error stays < ~1e-6.
# Degree-10 even polynomial (6 coeffs) gives ~1e-6 max error on [-pi, pi];
# total error ~2-3e-6, comfortably inside the 1e-5 test tolerance.
# ---------------------------------------------------------------------------
_TWO_PI = float(np.float32(2.0 * np.pi))
_INV_TWO_PI = float(1.0 / (2.0 * np.pi))


def _fit_even_cos_coeffs(num_coeffs=6):
    # Least squares in z = x^2 on Chebyshev-spaced nodes == (numerically) the
    # truncated even Chebyshev expansion of cos on [-pi, pi]; max error ~8e-7
    # for degree 10. Deterministic, computed once at import time.
    k = np.arange(4097, dtype=np.float64)
    x = np.pi * np.cos(np.pi * k / 4096.0)
    z = x * x
    vand = np.stack([z ** j for j in range(num_coeffs)], axis=-1)
    c, *_ = np.linalg.lstsq(vand, np.cos(x), rcond=None)
    assert float(np.max(np.abs(vand @ c - np.cos(x)))) < 5e-6
    return [float(v) for v in c]


_COS_COEFFS = _fit_even_cos_coeffs()


def _fast_cos(x):
    """cos(x) for bounded x (|x| <~ 8*pi), f32, VPU-only."""
    k = jnp.round(x * _INV_TWO_PI)
    r = x - k * _TWO_PI                     # r in [-pi, pi] (+ ~1e-6 slack)
    z = r * r
    acc = _COS_COEFFS[-1]
    for c in reversed(_COS_COEFFS[:-1]):    # Horner in z (5 mul-adds)
        acc = acc * z + c
    return acc


# ---------------------------------------------------------------------------
# Kernel factory
# ---------------------------------------------------------------------------
def _make_kernel(F, f_blk, t_tile, chunk):
    n_chunks = t_tile // chunk
    omega_scale = -(MATH_PI * SR) / (F - 1)

    # Channels used by more than one pair (the reference mic in the default
    # config) are hoisted once per time strip; single-use channels are loaded
    # inside the pair loop so their live range is one cosine chain.
    counts = {}
    for ch in INDEX_L + INDEX_R:
        counts[ch] = counts.get(ch, 0) + 1
    hoisted = tuple(sorted(c for c, k in counts.items() if k > 1))

    def kernel(dtau_ref, p_ref, o_ref):
        # dtau_ref : (N*6,) f32 in SMEM (whole array)
        # p_ref    : (1, 7, f_blk, t_tile) phase tile in VMEM
        # o_ref    : (1, f_blk, t_tile) angle-feature tile in VMEM
        n = pl.program_id(0)
        f_base = pl.program_id(1) * f_blk

        # Rebuild -omega from the (global) frequency index instead of shipping
        # a lane-padded dif operand. Garbage values in ragged F/T edge lanes
        # are only consumed elementwise and never written back.
        f_idx = jax.lax.broadcasted_iota(jnp.int32, (f_blk, 1), 0) + f_base
        neg_omega = f_idx.astype(jnp.float32) * omega_scale          # (f_blk, 1)
        difs = [dtau_ref[n * NUM_PAIRS + m] * neg_omega
                for m in range(NUM_PAIRS)]                           # 6 x (f_blk, 1)

        @pl.loop(0, n_chunks)
        def _strip(c):
            t0 = pl.multiple_of(c * chunk, chunk)
            ts = pl.ds(t0, chunk)
            cache = {ch: p_ref[0, ch, :, ts].astype(jnp.float32) for ch in hoisted}

            def load(ch):
                if ch in cache:
                    return cache[ch]
                return p_ref[0, ch, :, ts].astype(jnp.float32)

            acc = _fast_cos((load(INDEX_L[0]) - difs[0]) - load(INDEX_R[0]))
            for m in range(1, NUM_PAIRS):                            # static (6)
                acc = acc + _fast_cos((load(INDEX_L[m]) - difs[m]) - load(INDEX_R[m]))
            o_ref[0, :, ts] = (acc * (1.0 / NUM_PAIRS)).astype(o_ref.dtype)

    return kernel


# ---------------------------------------------------------------------------
# Tiling
# ---------------------------------------------------------------------------
def _pick_tiling(N, F, T, in_itemsize, out_itemsize):
    """Grid/tile selection: (f_blk, n_f, t_tile, n_t, chunk, vmem_limit)."""
    # Frequency block (second-to-last dim of the blocks: multiple of 8 or == F).
    if F <= _F_BLK_TARGET:
        f_blk = F
    else:
        n_f0 = pl.cdiv(F, _F_BLK_TARGET)
        f_blk = pl.cdiv(pl.cdiv(F, n_f0), 8) * 8
    n_f = pl.cdiv(F, f_blk)

    # Inner time strip: keep one (f_blk, chunk) f32 value <= ~8 vregs so the
    # per-pair cosine chain stays register-resident (no vst-slot spills).
    t128 = pl.cdiv(T, 128) * 128
    chunk = 128
    while (chunk < 512 and chunk * 2 <= t128
           and f_blk * (chunk * 2) * 4 <= _VALUE_BYTES_TARGET):
        chunk *= 2

    # Pipeline time tile: lane-dense multiple of `chunk`, sized from a VMEM
    # budget for the double-buffered in+out tiles, capped at 8192 lanes.
    per_lane = 2 * f_blk * (NUM_MICS * in_itemsize + out_itemsize)
    t_tile = (_VMEM_PIPELINE_BUDGET // per_lane) // chunk * chunk
    t_tile = int(min(max(t_tile, chunk), 8192, pl.cdiv(t128, chunk) * chunk))
    n_t = pl.cdiv(T, t_tile)

    # Keep >= 2 grid steps when possible so both v7x TensorCores get work.
    if N * n_f * n_t < 2 and t_tile > chunk:
        t_tile = pl.cdiv(pl.cdiv(t_tile, 2), chunk) * chunk
        n_t = pl.cdiv(T, t_tile)

    vmem_limit = max(int(per_lane * t_tile) + _VMEM_MARGIN, 16 * 1024 * 1024)
    return int(f_blk), int(n_f), int(t_tile), int(n_t), int(chunk), int(vmem_limit)


# ---------------------------------------------------------------------------
# Wrapper
# ---------------------------------------------------------------------------
def angle_feature(p, doa):
    """p: (N, 7, F, T) multi-channel phase; doa: (N,) radians -> af: (N, F, T).

    Mirrors AngleFeature.forward for the default config (num_doas == 1,
    princeton geometry).  Accepts bf16/f16 `p` too (compute is f32 in-kernel);
    passing bf16 halves HBM traffic, which mainly helps v5e.
    """
    N, C, F, T = p.shape
    assert C == NUM_MICS, f"princeton geometry expects {NUM_MICS} mics, got {C}"
    assert F >= 2, "num_bins must be >= 2 (omega = pi*sr*f/(num_bins-1))"

    # ---- tiny glue: per-pair oracle delay differences, flattened (N*6,) ----
    doa = doa.astype(jnp.float32)
    zero = jnp.zeros_like(doa)
    tau = R_ARRAY * jnp.stack(
        [
            zero,
            -jnp.cos(doa),
            -jnp.cos(MATH_PI / 3 - doa),
            -jnp.cos(2 * MATH_PI / 3 - doa),
            jnp.cos(doa),
            jnp.cos(MATH_PI / 3 - doa),
            jnp.cos(2 * MATH_PI / 3 - doa),
        ],
        axis=-1,
    ) / VELOCITY                                             # (N, 7)
    dtau = (tau[:, INDEX_L] - tau[:, INDEX_R]).reshape(-1).astype(jnp.float32)

    f_blk, n_f, t_tile, n_t, chunk, vmem_limit = _pick_tiling(
        N, F, T, p.dtype.itemsize, p.dtype.itemsize)

    kernel = _make_kernel(F, f_blk, t_tile, chunk)

    return pl.pallas_call(
        kernel,
        out_shape=jax.ShapeDtypeStruct((N, F, T), p.dtype),
        grid_spec=pltpu.PrefetchScalarGridSpec(
            num_scalar_prefetch=0,
            grid=(N, n_f, n_t),
            in_specs=[
                # (N*6,) tau differences: whole array resident in SMEM.
                pl.BlockSpec(memory_space=pltpu.MemorySpace.SMEM),
                # Phase tiles: full mic extent, F block, lane-dense time tile.
                # Ragged F/T edges are handled by Pallas block masking (no
                # wrapper-side padding copy).
                # (Add pipeline_mode=pl.Buffered(3) here on v5e if xprof shows
                #  exposed input DMA at f32.)
                pl.BlockSpec((1, NUM_MICS, f_blk, t_tile),
                             lambda n, f, t: (n, 0, f, t)),
            ],
            out_specs=pl.BlockSpec((1, f_blk, t_tile), lambda n, f, t: (n, f, t)),
        ),
        compiler_params=pltpu.CompilerParams(
            dimension_semantics=("parallel", "parallel", "parallel"),
            vmem_limit_bytes=vmem_limit,
        ),
    )(dtau, p)


def _angle_feature_ref(p, doa):
    """Pure-JAX mirror of the torch forward (num_doas=1 path) for verification."""
    N, C, F, T = p.shape
    omega = jnp.array(
        [MATH_PI * SR * f / (F - 1) for f in range(F)], dtype=jnp.float32
    )
    zero = jnp.zeros_like(doa)
    tau = R_ARRAY * jnp.stack(
        [
            zero,
            -jnp.cos(doa),
            -jnp.cos(MATH_PI / 3 - doa),
            -jnp.cos(2 * MATH_PI / 3 - doa),
            jnp.cos(doa),
            jnp.cos(MATH_PI / 3 - doa),
            jnp.cos(2 * MATH_PI / 3 - doa),
        ],
        axis=-1,
    ) / VELOCITY
    phi = tau[..., None] * (-omega)[None, None, :]           # N x 7 x F
    d = phi[..., None]                                       # N x 7 x F x 1
    dif = d[:, INDEX_L] - d[:, INDEX_R]                      # N x 6 x F x 1
    ipd = p[:, INDEX_L] - p[:, INDEX_R]                      # N x 6 x F x T
    return jnp.mean(jnp.cos(ipd - dif), axis=1)              # N x F x T


if __name__ == "__main__":
    # Small shapes: batch=2, mics=7 (fixed by geometry), num_bins=16, frames=128
    N, C, F, T = 2, NUM_MICS, 16, 128
    key = jax.random.PRNGKey(0)
    k1, k2 = jax.random.split(key)
    p = jax.random.uniform(k1, (N, C, F, T), jnp.float32, -MATH_PI, MATH_PI)
    doa = jax.random.uniform(k2, (N,), jnp.float32, 0.0, 2 * MATH_PI)

    af = jax.block_until_ready(angle_feature(p, doa))
    af_ref = _angle_feature_ref(p, doa)
    assert af.shape == (N, F, T)
    assert jnp.allclose(af, af_ref, atol=1e-5, rtol=1e-5), \
        float(jnp.max(jnp.abs(af - af_ref)))

    # Ragged time extent (96 < one 128-lane block): exercises the no-pad
    # edge-masking path that replaced the wrapper-side jnp.pad copy.
    T2 = 96
    p2 = jax.random.uniform(k1, (N, C, F, T2), jnp.float32, -MATH_PI, MATH_PI)
    af2 = jax.block_until_ready(angle_feature(p2, doa))
    assert af2.shape == (N, F, T2)
    assert jnp.allclose(af2, _angle_feature_ref(p2, doa), atol=1e-5, rtol=1e-5), \
        float(jnp.max(jnp.abs(af2 - _angle_feature_ref(p2, doa))))

    # TODO(synk): multi-DoA sampling path (num_doas != 1) and the Sequence-of-doa
    # multi-speaker concat in forward() are not exercised by the default config.
    print("KERNEL_OK")
</pallas_src>

<mosaic_0001>
module attributes {stable_mosaic.version = 11 : i64} {
  func.func @kernel(%arg0: i32, %arg1: i32, %arg2: i32, %arg3: memref<12xf32, #tpu.memory_space<smem>>, %arg4: memref<1x7x16x128xf32, #tpu.memory_space<vmem>>, %arg5: memref<1x16x128xf32, #tpu.memory_space<vmem>>) attributes {dimension_semantics = [#tpu.dimension_semantics<parallel>, #tpu.dimension_semantics<parallel>, #tpu.dimension_semantics<parallel>], iteration_bounds = array<i64: 2, 1, 1>, scalar_prefetch = 0 : i64, scratch_operands = 0 : i64, tpu.core_type = #tpu.core_type<tc>, window_params = [{transform_indices = @transform_0, window_bounds = array<i64: 12>}, {transform_indices = @transform_1, window_bounds = array<i64: 1, 7, 16, 128>}, {transform_indices = @transform_2, window_bounds = array<i64: 1, 16, 128>}]} {
    %c16_i32 = arith.constant 16 : i32
    %0 = arith.muli %arg1, %c16_i32 : i32
    %1 = tpu.iota {dimensions = array<i32: 0>} : vector<16x1xi32>
    %2 = vector.broadcast %0 : i32 to vector<16x1xi32>
    %3 = arith.addi %1, %2 : vector<16x1xi32>
    %4 = arith.sitofp %3 : vector<16x1xi32> to vector<16x1xf32>
    %cst = arith.constant -3351.03223 : f32
    %5 = vector.broadcast %cst : f32 to vector<16x1xf32>
    %6 = arith.mulf %4, %5 : vector<16x1xf32>
    %c6_i32 = arith.constant 6 : i32
    %7 = arith.muli %arg0, %c6_i32 : i32
    %c0_i32 = arith.constant 0 : i32
    %8 = arith.addi %7, %c0_i32 : i32
    %9 = arith.index_cast %8 : i32 to index
    %10 = memref.load %arg3[%9] : memref<12xf32, #tpu.memory_space<smem>>
    %11 = vector.broadcast %10 : f32 to vector<16x1xf32>
    %12 = arith.mulf %11, %6 : vector<16x1xf32>
    %c6_i32_0 = arith.constant 6 : i32
    %13 = arith.muli %arg0, %c6_i32_0 : i32
    %c1_i32 = arith.constant 1 : i32
    %14 = arith.addi %13, %c1_i32 : i32
    %15 = arith.index_cast %14 : i32 to index
    %16 = memref.load %arg3[%15] : memref<12xf32, #tpu.memory_space<smem>>
    %17 = vector.broadcast %16 : f32 to vector<16x1xf32>
    %18 = arith.mulf %17, %6 : vector<16x1xf32>
    %c6_i32_1 = arith.constant 6 : i32
    %19 = arith.muli %arg0, %c6_i32_1 : i32
    %c2_i32 = arith.constant 2 : i32
    %20 = arith.addi %19, %c2_i32 : i32
    %21 = arith.index_cast %20 : i32 to index
    %22 = memref.load %arg3[%21] : memref<12xf32, #tpu.memory_space<smem>>
    %23 = vector.broadcast %22 : f32 to vector<16x1xf32>
    %24 = arith.mulf %23, %6 : vector<16x1xf32>
    %c6_i32_2 = arith.constant 6 : i32
    %25 = arith.muli %arg0, %c6_i32_2 : i32
    %c3_i32 = arith.constant 3 : i32
    %26 = arith.addi %25, %c3_i32 : i32
    %27 = arith.index_cast %26 : i32 to index
    %28 = memref.load %arg3[%27] : memref<12xf32, #tpu.memory_space<smem>>
    %29 = vector.broadcast %28 : f32 to vector<16x1xf32>
    %30 = arith.mulf %29, %6 : vector<16x1xf32>
    %c6_i32_3 = arith.constant 6 : i32
    %31 = arith.muli %arg0, %c6_i32_3 : i32
    %c4_i32 = arith.constant 4 : i32
    %32 = arith.addi %31, %c4_i32 : i32
    %33 = arith.index_cast %32 : i32 to index
    %34 = memref.load %arg3[%33] : memref<12xf32, #tpu.memory_space<smem>>
    %35 = vector.broadcast %34 : f32 to vector<16x1xf32>
    %36 = arith.mulf %35, %6 : vector<16x1xf32>
    %c6_i32_4 = arith.constant 6 : i32
    %37 = arith.muli %arg0, %c6_i32_4 : i32
    %c5_i32 = arith.constant 5 : i32
    %38 = arith.addi %37, %c5_i32 : i32
    %39 = arith.index_cast %38 : i32 to index
    %40 = memref.load %arg3[%39] : memref<12xf32, #tpu.memory_space<smem>>
    %41 = vector.broadcast %40 : f32 to vector<16x1xf32>
    %42 = arith.mulf %41, %6 : vector<16x1xf32>
    %c0_i32_5 = arith.constant 0 : i32
    %c1_i32_6 = arith.constant 1 : i32
    %43 = arith.muli %c0_i32_5, %c1_i32_6 : i32
    %c0_i32_7 = arith.constant 0 : i32
    %44 = arith.addi %c0_i32_7, %43 : i32
    %c128_i32 = arith.constant 128 : i32
    %45 = arith.muli %44, %c128_i32 : i32
    %46 = tpu.assume_multiple %45, 128 : i32
    %c0 = arith.constant 0 : index
    %c0_8 = arith.constant 0 : index
    %c0_9 = arith.constant 0 : index
    %47 = arith.index_cast %46 : i32 to index
    %48 = vector.load %arg4[%c0, %c0_8, %c0_9, %47] : memref<1x7x16x128xf32, #tpu.memory_space<vmem>>, vector<1x1x16x128xf32>
    %49 = vector.shape_cast %48 : vector<1x1x16x128xf32> to vector<16x128xf32>
    %c0_10 = arith.constant 0 : index
    %c1 = arith.constant 1 : index
    %c0_11 = arith.constant 0 : index
    %50 = arith.index_cast %46 : i32 to index
    %51 = vector.load %arg4[%c0_10, %c1, %c0_11, %50] : memref<1x7x16x128xf32, #tpu.memory_space<vmem>>, vector<1x1x16x128xf32>
    %52 = vector.shape_cast %51 : vector<1x1x16x128xf32> to vector<16x128xf32>
    %53 = vector.broadcast %12 : vector<16x1xf32> to vector<16x128xf32>
    %54 = arith.subf %52, %53 : vector<16x128xf32>
    %55 = arith.subf %54, %49 : vector<16x128xf32>
    %cst_12 = arith.constant 0.159154937 : f32
    %56 = vector.broadcast %cst_12 : f32 to vector<16x128xf32>
    %57 = arith.mulf %55, %56 : vector<16x128xf32>
    %58 = math.roundeven %57 : vector<16x128xf32>
    %cst_13 = arith.constant 6.28318548 : f32
    %59 = vector.broadcast %cst_13 : f32 to vector<16x128xf32>
    %60 = arith.mulf %58, %59 : vector<16x128xf32>
    %61 = arith.subf %55, %60 : vector<16x128xf32>
    %62 = arith.mulf %61, %61 : vector<16x128xf32>
    %cst_14 = arith.constant -2.19727596E-7 : f32
    %63 = vector.broadcast %cst_14 : f32 to vector<16x128xf32>
    %64 = arith.mulf %63, %62 : vector<16x128xf32>
    %cst_15 = arith.constant 2.42028964E-5 : f32
    %65 = vector.broadcast %cst_15 : f32 to vector<16x128xf32>
    %66 = arith.addf %64, %65 : vector<16x128xf32>
    %67 = arith.mulf %66, %62 : vector<16x128xf32>
    %cst_16 = arith.constant -0.00138587866 : f32
    %68 = vector.broadcast %cst_16 : f32 to vector<16x128xf32>
    %69 = arith.addf %67, %68 : vector<16x128xf32>
    %70 = arith.mulf %69, %62 : vector<16x128xf32>
    %cst_17 = arith.constant 0.0416597761 : f32
    %71 = vector.broadcast %cst_17 : f32 to vector<16x128xf32>
    %72 = arith.addf %70, %71 : vector<16x128xf32>
    %73 = arith.mulf %72, %62 : vector<16x128xf32>
    %cst_18 = arith.constant -0.499994218 : f32
    %74 = vector.broadcast %cst_18 : f32 to vector<16x128xf32>
    %75 = arith.addf %73, %74 : vector<16x128xf32>
    %76 = arith.mulf %75, %62 : vector<16x128xf32>
    %cst_19 = arith.constant 0.999999225 : f32
    %77 = vector.broadcast %cst_19 : f32 to vector<16x128xf32>
    %78 = arith.addf %76, %77 : vector<16x128xf32>
    %c0_20 = arith.constant 0 : index
    %c2 = arith.constant 2 : index
    %c0_21 = arith.constant 0 : index
    %79 = arith.index_cast %46 : i32 to index
    %80 = vector.load %arg4[%c0_20, %c2, %c0_21, %79] : memref<1x7x16x128xf32, #tpu.memory_space<vmem>>, vector<1x1x16x128xf32>
    %81 = vector.shape_cast %80 : vector<1x1x16x128xf32> to vector<16x128xf32>
    %82 = vector.broadcast %18 : vector<16x1xf32> to vector<16x128xf32>
    %83 = arith.subf %81, %82 : vector<16x128xf32>
    %84 = arith.subf %83, %49 : vector<16x128xf32>
    %cst_22 = arith.constant 0.159154937 : f32
    %85 = vector.broadcast %cst_22 : f32 to vector<16x128xf32>
    %86 = arith.mulf %84, %85 : vector<16x128xf32>
    %87 = math.roundeven %86 : vector<16x128xf32>
    %cst_23 = arith.constant 6.28318548 : f32
    %88 = vector.broadcast %cst_23 : f32 to vector<16x128xf32>
    %89 = arith.mulf %87, %88 : vector<16x128xf32>
    %90 = arith.subf %84, %89 : vector<16x128xf32>
    %91 = arith.mulf %90, %90 : vector<16x128xf32>
    %cst_24 = arith.constant -2.19727596E-7 : f32
    %92 = vector.broadcast %cst_24 : f32 to vector<16x128xf32>
    %93 = arith.mulf %92, %91 : vector<16x128xf32>
    %cst_25 = arith.constant 2.42028964E-5 : f32
    %94 = vector.broadcast %cst_25 : f32 to vector<16x128xf32>
    %95 = arith.addf %93, %94 : vector<16x128xf32>
    %96 = arith.mulf %95, %91 : vector<16x128xf32>
    %cst_26 = arith.constant -0.00138587866 : f32
    %97 = vector.broadcast %cst_26 : f32 to vector<16x128xf32>
    %98 = arith.addf %96, %97 : vector<16x128xf32>
    %99 = arith.mulf %98, %91 : vector<16x128xf32>
    %cst_27 = arith.constant 0.0416597761 : f32
    %100 = vector.broadcast %cst_27 : f32 to vector<16x128xf32>
    %101 = arith.addf %99, %100 : vector<16x128xf32>
    %102 = arith.mulf %101, %91 : vector<16x128xf32>
    %cst_28 = arith.constant -0.499994218 : f32
    %103 = vector.broadcast %cst_28 : f32 to vector<16x128xf32>
    %104 = arith.addf %102, %103 : vector<16x128xf32>
    %105 = arith.mulf %104, %91 : vector<16x128xf32>
    %cst_29 = arith.constant 0.999999225 : f32
    %106 = vector.broadcast %cst_29 : f32 to vector<16x128xf32>
    %107 = arith.addf %105, %106 : vector<16x128xf32>
    %108 = arith.addf %78, %107 : vector<16x128xf32>
    %c0_30 = arith.constant 0 : index
    %c3 = arith.constant 3 : index
    %c0_31 = arith.constant 0 : index
    %109 = arith.index_cast %46 : i32 to index
    %110 = vector.load %arg4[%c0_30, %c3, %c0_31, %109] : memref<1x7x16x128xf32, #tpu.memory_space<vmem>>, vector<1x1x16x128xf32>
    %111 = vector.shape_cast %110 : vector<1x1x16x128xf32> to vector<16x128xf32>
    %112 = vector.broadcast %24 : vector<16x1xf32> to vector<16x128xf32>
    %113 = arith.subf %111, %112 : vector<16x128xf32>
    %114 = arith.subf %113, %49 : vector<16x128xf32>
    %cst_32 = arith.constant 0.159154937 : f32
    %115 = vector.broadcast %cst_32 : f32 to vector<16x128xf32>
    %116 = arith.mulf %114, %115 : vector<16x128xf32>
    %117 = math.roundeven %116 : vector<16x128xf32>
    %cst_33 = arith.constant 6.28318548 : f32
    %118 = vector.broadcast %cst_33 : f32 to vector<16x128xf32>
    %119 = arith.mulf %117, %118 : vector<16x128xf32>
    %120 = arith.subf %114, %119 : vector<16x128xf32>
    %121 = arith.mulf %120, %120 : vector<16x128xf32>
    %cst_34 = arith.constant -2.19727596E-7 : f32
    %122 = vector.broadcast %cst_34 : f32 to vector<16x128xf32>
    %123 = arith.mulf %122, %121 : vector<16x128xf32>
    %cst_35 = arith.constant 2.42028964E-5 : f32
    %124 = vector.broadcast %cst_35 : f32 to vector<16x128xf32>
    %125 = arith.addf %123, %124 : vector<16x128xf32>
    %126 = arith.mulf %125, %121 : vector<16x128xf32>
    %cst_36 = arith.constant -0.00138587866 : f32
    %127 = vector.broadcast %cst_36 : f32 to vector<16x128xf32>
    %128 = arith.addf %126, %127 : vector<16x128xf32>
    %129 = arith.mulf %128, %121 : vector<16x128xf32>
    %cst_37 = arith.constant 0.0416597761 : f32
    %130 = vector.broadcast %cst_37 : f32 to vector<16x128xf32>
    %131 = arith.addf %129, %130 : vector<16x128xf32>
    %132 = arith.mulf %131, %121 : vector<16x128xf32>
    %cst_38 = arith.constant -0.499994218 : f32
    %133 = vector.broadcast %cst_38 : f32 to vector<16x128xf32>
    %134 = arith.addf %132, %133 : vector<16x128xf32>
    %135 = arith.mulf %134, %121 : vector<16x128xf32>
    %cst_39 = arith.constant 0.999999225 : f32
    %136 = vector.broadcast %cst_39 : f32 to vector<16x128xf32>
    %137 = arith.addf %135, %136 : vector<16x128xf32>
    %138 = arith.addf %108, %137 : vector<16x128xf32>
    %c0_40 = arith.constant 0 : index
    %c4 = arith.constant 4 : index
    %c0_41 = arith.constant 0 : index
    %139 = arith.index_cast %46 : i32 to index
    %140 = vector.load %arg4[%c0_40, %c4, %c0_41, %139] : memref<1x7x16x128xf32, #tpu.memory_space<vmem>>, vector<1x1x16x128xf32>
    %141 = vector.shape_cast %140 : vector<1x1x16x128xf32> to vector<16x128xf32>
    %142 = vector.broadcast %30 : vector<16x1xf32> to vector<16x128xf32>
    %143 = arith.subf %141, %142 : vector<16x128xf32>
    %144 = arith.subf %143, %49 : vector<16x128xf32>
    %cst_42 = arith.constant 0.159154937 : f32
    %145 = vector.broadcast %cst_42 : f32 to vector<16x128xf32>
    %146 = arith.mulf %144, %145 : vector<16x128xf32>
    %147 = math.roundeven %146 : vector<16x128xf32>
    %cst_43 = arith.constant 6.28318548 : f32
    %148 = vector.broadcast %cst_43 : f32 to vector<16x128xf32>
    %149 = arith.mulf %147, %148 : vector<16x128xf32>
    %150 = arith.subf %144, %149 : vector<16x128xf32>
    %151 = arith.mulf %150, %150 : vector<16x128xf32>
    %cst_44 = arith.constant -2.19727596E-7 : f32
    %152 = vector.broadcast %cst_44 : f32 to vector<16x128xf32>
    %153 = arith.mulf %152, %151 : vector<16x128xf32>
    %cst_45 = arith.constant 2.42028964E-5 : f32
    %154 = vector.broadcast %cst_45 : f32 to vector<16x128xf32>
    %155 = arith.addf %153, %154 : vector<16x128xf32>
    %156 = arith.mulf %155, %151 : vector<16x128xf32>
    %cst_46 = arith.constant -0.00138587866 : f32
    %157 = vector.broadcast %cst_46 : f32 to vector<16x128xf32>
    %158 = arith.addf %156, %157 : vector<16x128xf32>
    %159 = arith.mulf %158, %151 : vector<16x128xf32>
    %cst_47 = arith.constant 0.0416597761 : f32
    %160 = vector.broadcast %cst_47 : f32 to vector<16x128xf32>
    %161 = arith.addf %159, %160 : vector<16x128xf32>
    %162 = arith.mulf %161, %151 : vector<16x128xf32>
    %cst_48 = arith.constant -0.499994218 : f32
    %163 = vector.broadcast %cst_48 : f32 to vector<16x128xf32>
    %164 = arith.addf %162, %163 : vector<16x128xf32>
    %165 = arith.mulf %164, %151 : vector<16x128xf32>
    %cst_49 = arith.constant 0.999999225 : f32
    %166 = vector.broadcast %cst_49 : f32 to vector<16x128xf32>
    %167 = arith.addf %165, %166 : vector<16x128xf32>
    %168 = arith.addf %138, %167 : vector<16x128xf32>
    %c0_50 = arith.constant 0 : index
    %c5 = arith.constant 5 : index
    %c0_51 = arith.constant 0 : index
    %169 = arith.index_cast %46 : i32 to index
    %170 = vector.load %arg4[%c0_50, %c5, %c0_51, %169] : memref<1x7x16x128xf32, #tpu.memory_space<vmem>>, vector<1x1x16x128xf32>
    %171 = vector.shape_cast %170 : vector<1x1x16x128xf32> to vector<16x128xf32>
    %172 = vector.broadcast %36 : vector<16x1xf32> to vector<16x128xf32>
    %173 = arith.subf %171, %172 : vector<16x128xf32>
    %174 = arith.subf %173, %49 : vector<16x128xf32>
    %cst_52 = arith.constant 0.159154937 : f32
    %175 = vector.broadcast %cst_52 : f32 to vector<16x128xf32>
    %176 = arith.mulf %174, %175 : vector<16x128xf32>
    %177 = math.roundeven %176 : vector<16x128xf32>
    %cst_53 = arith.constant 6.28318548 : f32
    %178 = vector.broadcast %cst_53 : f32 to vector<16x128xf32>
    %179 = arith.mulf %177, %178 : vector<16x128xf32>
    %180 = arith.subf %174, %179 : vector<16x128xf32>
    %181 = arith.mulf %180, %180 : vector<16x128xf32>
    %cst_54 = arith.constant -2.19727596E-7 : f32
    %182 = vector.broadcast %cst_54 : f32 to vector<16x128xf32>
    %183 = arith.mulf %182, %181 : vector<16x128xf32>
    %cst_55 = arith.constant 2.42028964E-5 : f32
    %184 = vector.broadcast %cst_55 : f32 to vector<16x128xf32>
    %185 = arith.addf %183, %184 : vector<16x128xf32>
    %186 = arith.mulf %185, %181 : vector<16x128xf32>
    %cst_56 = arith.constant -0.00138587866 : f32
    %187 = vector.broadcast %cst_56 : f32 to vector<16x128xf32>
    %188 = arith.addf %186, %187 : vector<16x128xf32>
    %189 = arith.mulf %188, %181 : vector<16x128xf32>
    %cst_57 = arith.constant 0.0416597761 : f32
    %190 = vector.broadcast %cst_57 : f32 to vector<16x128xf32>
    %191 = arith.addf %189, %190 : vector<16x128xf32>
    %192 = arith.mulf %191, %181 : vector<16x128xf32>
    %cst_58 = arith.constant -0.499994218 : f32
    %193 = vector.broadcast %cst_58 : f32 to vector<16x128xf32>
    %194 = arith.addf %192, %193 : vector<16x128xf32>
    %195 = arith.mulf %194, %181 : vector<16x128xf32>
    %cst_59 = arith.constant 0.999999225 : f32
    %196 = vector.broadcast %cst_59 : f32 to vector<16x128xf32>
    %197 = arith.addf %195, %196 : vector<16x128xf32>
    %198 = arith.addf %168, %197 : vector<16x128xf32>
    %c0_60 = arith.constant 0 : index
    %c6 = arith.constant 6 : index
    %c0_61 = arith.constant 0 : index
    %199 = arith.index_cast %46 : i32 to index
    %200 = vector.load %arg4[%c0_60, %c6, %c0_61, %199] : memref<1x7x16x128xf32, #tpu.memory_space<vmem>>, vector<1x1x16x128xf32>
    %201 = vector.shape_cast %200 : vector<1x1x16x128xf32> to vector<16x128xf32>
    %202 = vector.broadcast %42 : vector<16x1xf32> to vector<16x128xf32>
    %203 = arith.subf %201, %202 : vector<16x128xf32>
    %204 = arith.subf %203, %49 : vector<16x128xf32>
    %cst_62 = arith.constant 0.159154937 : f32
    %205 = vector.broadcast %cst_62 : f32 to vector<16x128xf32>
    %206 = arith.mulf %204, %205 : vector<16x128xf32>
    %207 = math.roundeven %206 : vector<16x128xf32>
    %cst_63 = arith.constant 6.28318548 : f32
    %208 = vector.broadcast %cst_63 : f32 to vector<16x128xf32>
    %209 = arith.mulf %207, %208 : vector<16x128xf32>
    %210 = arith.subf %204, %209 : vector<16x128xf32>
    %211 = arith.mulf %210, %210 : vector<16x128xf32>
    %cst_64 = arith.constant -2.19727596E-7 : f32
    %212 = vector.broadcast %cst_64 : f32 to vector<16x128xf32>
    %213 = arith.mulf %212, %211 : vector<16x128xf32>
    %cst_65 = arith.constant 2.42028964E-5 : f32
    %214 = vector.broadcast %cst_65 : f32 to vector<16x128xf32>
    %215 = arith.addf %213, %214 : vector<16x128xf32>
    %216 = arith.mulf %215, %211 : vector<16x128xf32>
    %cst_66 = arith.constant -0.00138587866 : f32
    %217 = vector.broadcast %cst_66 : f32 to vector<16x128xf32>
    %218 = arith.addf %216, %217 : vector<16x128xf32>
    %219 = arith.mulf %218, %211 : vector<16x128xf32>
    %cst_67 = arith.constant 0.0416597761 : f32
    %220 = vector.broadcast %cst_67 : f32 to vector<16x128xf32>
    %221 = arith.addf %219, %220 : vector<16x128xf32>
    %222 = arith.mulf %221, %211 : vector<16x128xf32>
    %cst_68 = arith.constant -0.499994218 : f32
    %223 = vector.broadcast %cst_68 : f32 to vector<16x128xf32>
    %224 = arith.addf %222, %223 : vector<16x128xf32>
    %225 = arith.mulf %224, %211 : vector<16x128xf32>
    %cst_69 = arith.constant 0.999999225 : f32
    %226 = vector.broadcast %cst_69 : f32 to vector<16x128xf32>
    %227 = arith.addf %225, %226 : vector<16x128xf32>
    %228 = arith.addf %198, %227 : vector<16x128xf32>
    %cst_70 = arith.constant 0.166666672 : f32
    %229 = vector.broadcast %cst_70 : f32 to vector<16x128xf32>
    %230 = arith.mulf %228, %229 : vector<16x128xf32>
    %c0_71 = arith.constant 0 : index
    %c0_72 = arith.constant 0 : index
    %231 = arith.index_cast %46 : i32 to index
    %232 = vector.load %arg5[%c0_71, %c0_72, %231] : memref<1x16x128xf32, #tpu.memory_space<vmem>>, vector<1x16x128xf32>
    %233 = vector.shape_cast %232 : vector<1x16x128xf32> to vector<16x128xf32>
    %234 = vector.shape_cast %230 : vector<16x128xf32> to vector<1x16x128xf32>
    tpu.vector_store %arg5[%c0_71, %c0_72, %231], %234 {strides = array<i32>} : memref<1x16x128xf32, #tpu.memory_space<vmem>>, vector<1x16x128xf32>,
    %c1_i32_73 = arith.constant 1 : i32
    return
  }
  func.func @transform_0(%arg0: i32, %arg1: i32, %arg2: i32) -> i32 {
    %c0_i32 = arith.constant 0 : i32
    %c0_i32_0 = arith.constant 0 : i32
    return %c0_i32 : i32
  }
  func.func @transform_1(%arg0: i32, %arg1: i32, %arg2: i32) -> (i32, i32, i32, i32) {
    %c0_i32 = arith.constant 0 : i32
    %c0_i32_0 = arith.constant 0 : i32
    return %arg0, %c0_i32, %arg1, %arg2 : i32, i32, i32, i32
  }
  func.func @transform_2(%arg0: i32, %arg1: i32, %arg2: i32) -> (i32, i32, i32) {
    %c0_i32 = arith.constant 0 : i32
    return %arg0, %arg1, %arg2 : i32, i32, i32
  }
}

</mosaic_0001>

<bundles_post_ra>
// kernel: tpu_custom_call.1
= control target key start
LH: loop header
LB: loop body
LE: loop exit
PB: predicated region body
PF: predicated region fallthrough
CT: control target
= control target key end

     0   :  { %7 = vsyncpa [#allocation5], 0  ;;  %s1347_s0 = inlined_call_operand.hbm [shape: f32[12], index: 0, kind: input, shape index: {}]   ;;  %s1348_s1 = inlined_call_operand.hbm [shape: f32[2,7,16,128], index: 1, kind: input, shape index: {}]   ;;  %s1349_s2 = inlined_call_operand.hbm [shape: f32[2,16,128], index: 2, kind: output, shape index: {}]  }
   0x1   :  { %8 = vsyncpa [#allocation3], 0 }
   0x2   :  { %10 = vsyncpa [#allocation3 + $0x1], 0 }
   0x3   :  { %11 = vsyncpa [#allocation4], 0 }
   0x4   :  { %13 = vsyncpa [#allocation4 + $0x1], 0  ;;  %s968_s9 = smov 0   ;;  %s970_s10 = smov 0  }
   0x5   :  { %s972_s11 = smov 0   ;;  %s974_s12 = smov 0  }
   0x6   :  { %s976_s13 = smov 0   ;;  %s978_s14 = smov 0  }
   0x7 LB: > { %s618_s15 = sadd.s32 4294967295, %s944_s14   ;;  %s619_s16 = sadd.s32 4294967294, %s944_s14   ;;  %s944_s14 = sphi %s978_s14, %s19_s14   ;;  %s940_s13 = sphi %s976_s13, %s1378_s13   ;;  %s936_s12 = sphi %s974_s12, %s1377_s12   ;;  %s932_s11 = sphi %s972_s11, %s1376_s11   ;;  %s928_s10 = sphi %s970_s10, %s1375_s10   ;;  %s924_s9 = sphi %s968_s9, %s1374_s9  }
   0x8   : > { %s70_s17 = sadd.s32 1, %s932_s11  ;;  %p77_p0 = scmp.ne.s32.totalorder %s932_s11, %s928_s10 }
   0x9   : > { %p78_p1 = scmp.eq.s32.totalorder %s944_s14, 0  ;;  %p83_p2 = scmp.ne.s32.totalorder %s928_s10, %s924_s9 }
   0xa   : > { %p1006_p3 = scmp.eq.s32.totalorder %s618_s15, 0  ;;  %p111_p4 = scmp.eq.s32.totalorder %s618_s15, 1 }
   0xb   : > { %p79_p5 = por %p78_p1, %p77_p0  ;;  %p117_p6 = scmp.eq.s32.totalorder %s619_s16, 1 }
   0xc   : > { %p1012_p7 = por %p1006_p3, %p83_p2  ;;  %p1016_p8 = por %p111_p4, %p77_p0 }
   0xd   : > { %p1020_p9 = por %p117_p6, %p83_p2  ;;  %p620_p10 = scmp.ge.s32.totalorder %s944_s14, 1 }
   0xe   : > { %p124_p11 = scmp.lt.s32.totalorder %s944_s14, 3  ;;  %p765_p1 = scmp.lt.s32.totalorder %s944_s14, 2 }
   0xf   : > { %s1353_s21 = scalar_select %p1020_p9, 1, 0 }
  0x10   : > { %p1027_p13 = pnand %p620_p10, %p124_p11  ;;  %s146_s23 = sand.u32 1, %s932_s11  }
  0x11   : > { %p1035_p2 = pnand %p765_p1, %p79_p5  ;;  %s38_s25 = sadd.s32 1, %s940_s13 }
  0x12   : > { %p752_p0 = pneg %p1027_p13  ;;  %s645_s26 = smul.u32 112, %s146_s23 }
  0x13   : > { %p40_p6 = scmp.ge.s32.totalorder %s38_s25, 2  ;;  %s946_s27 = smov [#allocation2]  }
  0x14   : > { %p753_p4 = pnand %p752_p0, %p1006_p3  ;;  %s646_s30 = smul.u32 1792, %s940_s13 }
  0x15   : > { %s1380_s25 = smov (%p40_p6, %s38_s25), 0  ;;  %s150_s4 = scalar_lea.vmem [#allocation6], %s645_s26 }
  0x16   : > { %755 = dma.hbm_to_smem (!%p753_p4), %s1347_s0, 16, %s946_s27, [#allocation5]  }
  0x17   : > { %s63_s3 = ssub.s32 %s940_s13, %s1380_s25  ;;  %s160_s5 = sshll.u32 %s150_s4, 4  ;;  %s161_s5 = int_to_ptr.vmem [resolvable:$true] %s160_s5 }
  0x18   : > { %p68_p5 = scmp.eq.s32.totalorder %s63_s3, 0  ;;  %s159_s8 = scalar_lea.hbm %s1348_s1, %s646_s30 }
  0x19   : > { %s147_s16 = scalar_lea.sflag [#allocation3], %s146_s23  ;;  %p834_p10 = pneg %p1035_p2 }
  0x1a   : > { %s1056_s15 = scalar_select %p68_p5, %s932_s11, %s70_s17  }
  0x1b   : > { %s845_s27 = scalar_lea.vmem %s161_s5, 1792  ;;  %s947_s28 = smov [#allocation6]  }
  0x1c   : > { %p846_p11 = scmp.ne.s32.totalorder %s161_s5, %s845_s27  ;;  %s850_s29 = sshll.u32 %s947_s28, 4  ;;  %s851_s29 = int_to_ptr.vmem [resolvable:$false] %s850_s29 }
  0x1d   : > { %s852_s26 = scalar_lea.vmem %s851_s29, 3584  ;;  %p853_p4 = scmp.lt.s32.totalorder %s161_s5, %s851_s29 }
  0x1e   : > { %p848_p1 = pnand %p846_p11, %p834_p10  ;;  %p854_p6 = scmp.lt.s32.totalorder %s852_s26, %s845_s27 }
  0x20   : > { %p849_p0 = pneg %p848_p1  ;;  %p855_p12 = por %p854_p6, %p853_p4 }
  0x22   : > { %p856_p9 = pnand %p855_p12, %p849_p0 }
  0x24   : > { %859 = shalt.err (!%p856_p9)
}
  0x25   : > { %s948_s30 = smov 128   ;;  %s949_s17 = smov 8  }
  0x26   : > { %759 = dma.hbm_to_vmem [thread:$0]  (!%p1035_p2), %s159_s8, 1792, %s161_s5, %s147_s16, %s948_s30, %s948_s30, %s949_s17  }
  0x27   : > { %172 = sbr.rel (%p1027_p13) target bundleno = 168 (0xa8), region = 28 }
  0x2c   : > { %911 = dma.done.wait (%p1006_p3), [#allocation5], 16  }
  0x2d   : > { %913 = vsyncadd (%p1006_p3), [#allocation5], 4294967280  ;;  %s1069_s23 = sand.u32 1, %s928_s10  }
  0x2e   : > { %s647_s3 = smul.u32 112, %s1069_s23  ;;  %s179_s4 = scalar_lea.sflag [#allocation3], %s1069_s23 }
  0x30   : > { %s1073_s6 = scalar_lea.vmem [#allocation6], %s647_s3 }
  0x31   : > { %915 = dma.done.wait (%p1012_p7), %s179_s4, 1792  }
  0x32   : > { %917 = vsyncadd (%p1012_p7), %s179_s4, 4294965504 }
  0x33   : > { %187 = sfence }
  0x34   : > { %v207_v0 = vlaneseq  ;;  %s1080_s18 = smul.u32 6, %s936_s12  ;;  %v627_v8 = vld [vmem:[%s1073_s6 + $0x10] sm:$0xff]  ;;  %v628_v11 = vld [vmem:[%s1073_s6 + $0x18] sm:$0xff]  ;;  %v1098_v15 = vld [vmem:[%s1073_s6] sm:$0xff]  ;;  %s626_s30 = sshll.u32 %s1069_s23, 4 }
  0x35   : > { %v1102_v17 = vld [vmem:[%s1073_s6 + $0x8] sm:$0xff]  ;;  %v629_v19 = vld [vmem:[%s1073_s6 + $0x20] sm:$0xff]  ;;  %v631_v25 = vld [vmem:[%s1073_s6 + $0x30] sm:$0xff]  ;;  %s644_s17 = sshll.u32 %s936_s12, 8  ;;  %s203_s3 = scalar_lea.vmem [#allocation7], %s626_s30 }
  0x36   : > { %v208_v1 = vshrl.u32 %v207_v0, 7  ;;  %s218_s22 = sld [smem:[#allocation2 + %s1080_s18]]  ;;  %s222_s24 = sadd.s32 1, %s1080_s18  ;;  %v630_v22 = vld [vmem:[%s1073_s6 + $0x28] sm:$0xff]  ;;  %v632_v31 = vld [vmem:[%s1073_s6 + $0x38] sm:$0xff]  ;;  %v633_v52 = vld [vmem:[%s1073_s6 + $0x40] sm:$0xff] }
  0x37   : > { %s223_s5 = sld [smem:[#allocation2 + %s222_s24]]  ;;  %s227_s7 = sadd.s32 2, %s1080_s18 }
  0x38   : > { %v209_v2 = vadd.s32 8, %v208_v1  ;;  %v213_v3 = vcvt.s32.f32 %v208_v1  ;;  %s228_s19 = sld [smem:[#allocation2 + %s227_s7]]  ;;  %s232_s8 = sadd.s32 3, %s1080_s18 }
  0x39   : > { %s1086_s16 = sld [smem:[#allocation2 + %s232_s8]]  ;;  %s237_s27 = sadd.s32 4, %s1080_s18 }
  0x3a   : > { %v214_v4 = vcvt.s32.f32 %v209_v2  ;;  %v1088_v5 = vmul.f32 -3351.0322, %v213_v3  ;;  %s1176_s28 = sld [smem:[#allocation2 + %s237_s27]]  ;;  %s242_s29 = sadd.s32 5, %s1080_s18 }
  0x3b   : > { %s1196_s26 = sld [smem:[#allocation2 + %s242_s29]]  ;;  %s508_s4 = sshll.u32 %s203_s3, 4  ;;  %s1299_s4 = int_to_ptr.vmem [resolvable:$true] %s508_s4 }
  0x3c   : > { %v1090_v6 = vmul.f32 -3351.0322, %v214_v4  ;;  %v219_v7 = vstv %s218_s22  ;;  %s1297_s22 = scalar_lea.hbm %s1349_s2, %s644_s17  ;;  %s492_s24 = scalar_lea.sflag [#allocation4], %s1069_s23 }
  0x3d   : > { %v220_v9 = vmul.f32 %v219_v7, %v1088_v5  ;;  %v224_v10 = vstv %s223_s5  ;;  %s860_s5 = scalar_lea.vmem %s1299_s4, 256  ;;  %s950_s12 = smov [#allocation7]  }
  0x3e   : > { %v221_v12 = vmul.f32 %v219_v7, %v1090_v6  ;;  %v225_v13 = vmul.f32 %v224_v10, %v1088_v5  ;;  %v229_v14 = vstv %s228_s19  ;;  %v226_v16 = vmul.f32 %v224_v10, %v1090_v6  ;;  %p861_p3 = scmp.ne.s32.totalorder %s1299_s4, %s860_s5  ;;  %s864_s7 = sshll.u32 %s950_s12, 4  ;;  %s865_s7 = int_to_ptr.vmem [resolvable:$false] %s864_s7 }
  0x3f   : > { %v253_v18 = vsub.f32 %v627_v8, %v220_v9  ;;  %v230_v20 = vmul.f32 %v229_v14, %v1088_v5  ;;  %v234_v23 = vstv %s1086_s16  ;;  %v231_v26 = vmul.f32 %v229_v14, %v1090_v6  ;;  %v638_v8 = vld [vmem:[%s1073_s6 + $0x68] sm:$0xff]  ;;  %s866_s19 = scalar_lea.vmem %s865_s7, 512  ;;  %p867_p12 = scmp.lt.s32.totalorder %s1299_s4, %s865_s7 }
  0x40   : > { %v254_v21 = vsub.f32 %v628_v11, %v221_v12  ;;  %v291_v28 = vsub.f32 %v629_v19, %v225_v13  ;;  %v292_v30 = vsub.f32 %v630_v22, %v226_v16  ;;  %v235_v32 = vmul.f32 %v234_v23, %v1088_v5  ;;  %p862_p7 = pnand %p861_p3, %p1016_p8  ;;  %p868_p13 = scmp.lt.s32.totalorder %s866_s19, %s860_s5 }
  0x41   : > { %v255_v24 = vsub.f32 %v253_v18, %v1098_v15  ;;  %v331_v35 = vsub.f32 %v631_v25, %v230_v20  ;;  %v1116_v36 = vmul.f32 %v234_v23, %v1090_v6  ;;  %v332_v43 = vsub.f32 %v632_v31, %v231_v26 }
  0x42   : > { %v256_v27 = vsub.f32 %v254_v21, %v1102_v17  ;;  %v293_v34 = vsub.f32 %v291_v28, %v1098_v15  ;;  %v1119_v39 = vsub.f32 %v292_v30, %v1102_v17  ;;  %v371_v4 = vsub.f32 %v633_v52, %v235_v32  ;;  %p863_p9 = pneg %p862_p7  ;;  %p869_p2 = por %p868_p13, %p867_p12 }
  0x43   : > { %v257_v29 = vmul.f32 0.15915494, %v255_v24  ;;  %v1127_v51 = vsub.f32 %v331_v35, %v1098_v15  ;;  %v1135_v0 = vsub.f32 %v332_v43, %v1102_v17  ;;  %v634_v35 = vld [vmem:[%s1073_s6 + $0x48] sm:$0xff] }
  0x44   : > { %v258_v33 = vmul.f32 0.15915494, %v256_v27  ;;  %v295_v42 = vmul.f32 0.15915494, %v293_v34  ;;  %v296_v47 = vmul.f32 0.15915494, %v1119_v39  ;;  %v1154_v25 = vsub.f32 %v371_v4, %v1098_v15  ;;  %p870_p5 = pnand %p869_p2, %p863_p9 }
  0x45   : > { %v648_v37 = vand.u32 2147483647, %v257_v29  ;;  %v650_v38 = vcvt.f32.s32 %v257_v29  ;;  %v653_v45 = vand.u32 2147483648, %v257_v29  ;;  %v335_v3 = vmul.f32 0.15915494, %v1127_v51 }
  0x46   : > { %v656_v40 = vand.u32 2147483647, %v258_v33  ;;  %v658_v41 = vcvt.f32.s32 %v258_v33  ;;  %v661_v46 = vand.u32 2147483648, %v258_v33  ;;  %v666_v50 = vcvt.f32.s32 %v295_v42 }
  0x47   : > { %v651_v44 = vcvt.s32.f32 %v650_v38  ;;  %vm1122_vm0 = vcmp.lt.f32.partialorder %v648_v37, 8388608.0  ;;  %v664_v54 = vand.u32 2147483647, %v295_v42  ;;  %v672_v55 = vand.u32 2147483647, %v296_v47 }
  0x48   : > { %v659_v49 = vcvt.s32.f32 %v658_v41  ;;  %v674_v56 = vcvt.f32.s32 %v296_v47  ;;  %vm1130_vm1 = vcmp.lt.f32.partialorder %v656_v40, 8388608.0  ;;  %v667_v59 = vcvt.s32.f32 %v666_v50 }
  0x49   : > { %v652_v53 = vand.u32 2147483647, %v651_v44  ;;  %v669_v60 = vand.u32 2147483648, %v295_v42  ;;  %v677_v63 = vand.u32 2147483648, %v296_v47  ;;  %vm1140_vm2 = vcmp.lt.f32.partialorder %v664_v54, 8388608.0 }
  0x4a   : > { %v660_v58 = vand.u32 2147483647, %v659_v49  ;;  %v675_v62 = vcvt.s32.f32 %v674_v56  ;;  %v668_v2 = vand.u32 2147483647, %v667_v59  ;;  %vm1144_vm3 = vcmp.lt.f32.partialorder %v672_v55, 8388608.0 }
  0x4b   : > { %v654_v61 = vor.u32 %v653_v45, %v652_v53  ;;  %v336_v14 = vmul.f32 0.15915494, %v1135_v0  ;;  %v680_v19 = vand.u32 2147483647, %v335_v3  ;;  %v682_v20 = vcvt.f32.s32 %v335_v3 }
  0x4c   : > { %v662_v1 = vor.u32 %v661_v46, %v660_v58  ;;  %v676_v10 = vand.u32 2147483647, %v675_v62  ;;  %v670_v13 = vor.u32 %v669_v60, %v668_v2  ;;  %v685_v23 = vand.u32 2147483648, %v335_v3 }
  0x4d   : > { %v655_v7 = vsel %vm1122_vm0, %v654_v61, %v257_v29  ;;  %v683_v30 = vcvt.s32.f32 %v682_v20  ;;  %vm1161_vm4 = vcmp.lt.f32.partialorder %v680_v19, 8388608.0  ;;  %v688_v40 = vand.u32 2147483647, %v336_v14 }
  0x4e   : > { %v663_v11 = vsel %vm1130_vm1, %v662_v1, %v258_v33  ;;  %v261_v12 = vmul.f32 6.2831855, %v655_v7  ;;  %v678_v18 = vor.u32 %v677_v63, %v676_v10  ;;  %v671_v22 = vsel %vm1140_vm2, %v670_v13, %v295_v42 }
  0x4f   : > { %v262_v16 = vmul.f32 6.2831855, %v663_v11  ;;  %v299_v29 = vmul.f32 6.2831855, %v671_v22  ;;  %v690_v33 = vcvt.f32.s32 %v336_v14  ;;  %v684_v38 = vand.u32 2147483647, %v683_v30 }
  0x50   : > { %v263_v21 = vsub.f32 %v255_v24, %v261_v12  ;;  %v679_v28 = vsel %vm1144_vm3, %v678_v18, %v296_v47  ;;  %v693_v42 = vand.u32 2147483648, %v336_v14  ;;  %v375_v43 = vmul.f32 0.15915494, %v1154_v25 }
  0x51   : > { %v264_v26 = vsub.f32 %v256_v27, %v262_v16  ;;  %v300_v32 = vmul.f32 6.2831855, %v679_v28  ;;  %v301_v24 = vsub.f32 %v293_v34, %v299_v29  ;;  %v691_v27 = vcvt.s32.f32 %v690_v33 }
  0x52   : > { %v1158_v31 = vmul.f32 %v263_v21, %v263_v21  ;;  %v686_v46 = vor.u32 %v685_v23, %v684_v38  ;;  %v372_v34 = vsub.f32 %v634_v35, %v1116_v36  ;;  %vm689_vm5 = vcmp.lt.f32.partialorder %v688_v40, 8388608.0  ;;  %v635_v35 = vld [vmem:[%s1073_s6 + $0x50] sm:$0xff]  ;;  %v636_v40 = vld [vmem:[%s1073_s6 + $0x58] sm:$0xff] }
  0x53   : > { %v1165_v41 = vmul.f32 %v264_v26, %v264_v26  ;;  %v302_v45 = vsub.f32 %v1119_v39, %v300_v32  ;;  %v1172_v47 = vmul.f32 %v301_v24, %v301_v24  ;;  %v692_v48 = vand.u32 2147483647, %v691_v27 }
  0x54   : > { %v267_v44 = vmul.f32 -2.197276e-07, %v1158_v31  ;;  %v687_v49 = vsel %vm1161_vm4, %v686_v46, %v335_v3  ;;  %v698_v50 = vcvt.f32.s32 %v375_v43  ;;  %v1182_v39 = vsub.f32 %v372_v34, %v1102_v17 }
  0x55   : > { %v268_v52 = vmul.f32 -2.197276e-07, %v1165_v41  ;;  %v694_v53 = vor.u32 %v693_v42, %v692_v48  ;;  %v1179_v55 = vmul.f32 %v302_v45, %v302_v45  ;;  %v305_v56 = vmul.f32 -2.197276e-07, %v1172_v47 }
  0x56   : > { %v269_v54 = vadd.f32 2.4202896e-05, %v267_v44  ;;  %v699_v36 = vcvt.s32.f32 %v698_v50  ;;  %v339_v58 = vmul.f32 6.2831855, %v687_v49  ;;  %v696_v59 = vand.u32 2147483647, %v375_v43 }
  0x57   : > { %v695_v57 = vsel %vm689_vm5, %v694_v53, %v336_v14  ;;  %v270_v62 = vadd.f32 2.4202896e-05, %v268_v52  ;;  %v701_v63 = vand.u32 2147483648, %v375_v43  ;;  %v306_v2 = vmul.f32 -2.197276e-07, %v1179_v55 }
  0x58   : > { %v340_v60 = vmul.f32 6.2831855, %v695_v57  ;;  %v700_v61 = vand.u32 2147483647, %v699_v36  ;;  %v271_v1 = vmul.f32 %v269_v54, %v1158_v31  ;;  %v376_v3 = vmul.f32 0.15915494, %v1182_v39 }
  0x59   : > { %v307_v4 = vadd.f32 2.4202896e-05, %v305_v56  ;;  %v341_v7 = vsub.f32 %v1127_v51, %v339_v58  ;;  %vm1190_vm6 = vcmp.lt.f32.partialorder %v696_v59, 8388608.0  ;;  %v239_v11 = vstv %s1176_s28 }
  0x5a   : > { %v702_v9 = vor.u32 %v701_v63, %v700_v61  ;;  %v342_v10 = vsub.f32 %v1135_v0, %v340_v60  ;;  %v272_v12 = vmul.f32 %v270_v62, %v1165_v41  ;;  %v273_v13 = vadd.f32 -0.0013858787, %v271_v1  ;;  %v637_v60 = vld [vmem:[%s1073_s6 + $0x60] sm:$0xff] }
  0x5b   : > { %v308_v14 = vadd.f32 2.4202896e-05, %v306_v2  ;;  %v706_v18 = vcvt.f32.s32 %v376_v3  ;;  %v309_v51 = vmul.f32 %v307_v4, %v1172_v47  ;;  %v1202_v19 = vmul.f32 %v341_v7, %v341_v7 }
  0x5c   : > { %v703_v16 = vsel %vm1190_vm6, %v702_v9, %v375_v43  ;;  %v704_v20 = vand.u32 2147483647, %v376_v3  ;;  %v1204_v21 = vmul.f32 %v342_v10, %v342_v10  ;;  %v709_v22 = vand.u32 2147483648, %v376_v3 }
  0x5d   : > { %v707_v0 = vcvt.s32.f32 %v706_v18  ;;  %v240_v23 = vmul.f32 %v239_v11, %v1088_v5  ;;  %v241_v26 = vmul.f32 %v239_v11, %v1090_v6  ;;  %v379_v28 = vmul.f32 6.2831855, %v703_v16 }
  0x5e   : > { %v274_v29 = vadd.f32 -0.0013858787, %v272_v12  ;;  %v275_v30 = vmul.f32 %v273_v13, %v1158_v31  ;;  %v310_v32 = vmul.f32 %v308_v14, %v1179_v55  ;;  %v311_v24 = vadd.f32 -0.0013858787, %v309_v51 }
  0x5f   : > { %v708_v33 = vand.u32 2147483647, %v707_v0  ;;  %v345_v37 = vmul.f32 -2.197276e-07, %v1202_v19  ;;  %vm705_vm7 = vcmp.lt.f32.partialorder %v704_v20, 8388608.0  ;;  %v381_v38 = vsub.f32 %v1154_v25, %v379_v28 }
  0x60   : > { %v346_v27 = vmul.f32 -2.197276e-07, %v1204_v21  ;;  %v244_v43 = vstv %s1196_s26  ;;  %v411_v45 = vsub.f32 %v635_v35, %v240_v23  ;;  %v276_v46 = vmul.f32 %v274_v29, %v1165_v41 }
  0x61   : > { %v710_v42 = vor.u32 %v709_v22, %v708_v33  ;;  %v1216_v44 = vmul.f32 %v381_v38, %v381_v38  ;;  %v277_v34 = vadd.f32 0.041659776, %v275_v30  ;;  %v412_v49 = vsub.f32 %v636_v40, %v241_v26 }
  0x62   : > { %v312_v50 = vadd.f32 -0.0013858787, %v310_v32  ;;  %v313_v52 = vmul.f32 %v311_v24, %v1172_v47  ;;  %v347_v53 = vadd.f32 2.4202896e-05, %v345_v37  ;;  %v348_v25 = vadd.f32 2.4202896e-05, %v346_v27 }
  0x63   : > { %v711_v48 = vsel %vm705_vm7, %v710_v42, %v376_v3  ;;  %v385_v36 = vmul.f32 -2.197276e-07, %v1216_v44  ;;  %v413_v56 = vsub.f32 %v411_v45, %v1098_v15  ;;  %v414_v57 = vsub.f32 %v412_v49, %v1102_v17 }
  0x64   : > { %v380_v54 = vmul.f32 6.2831855, %v711_v48  ;;  %v245_v58 = vmul.f32 %v244_v43, %v1088_v5  ;;  %v246_v61 = vmul.f32 %v244_v43, %v1090_v6  ;;  %v278_v62 = vadd.f32 0.041659776, %v276_v46 }
  0x65   : > { %v415_v63 = vmul.f32 0.15915494, %v413_v56  ;;  %v416_v1 = vmul.f32 0.15915494, %v414_v57  ;;  %v279_v2 = vmul.f32 %v277_v34, %v1158_v31  ;;  %v314_v3 = vmul.f32 %v312_v50, %v1179_v55 }
  0x66   : > { %v382_v59 = vsub.f32 %v1182_v39, %v380_v54  ;;  %v349_v4 = vmul.f32 %v347_v53, %v1202_v19  ;;  %v315_v9 = vadd.f32 0.041659776, %v313_v52  ;;  %v350_v5 = vmul.f32 %v348_v25, %v1204_v21 }
  0x67   : > { %v387_v10 = vadd.f32 2.4202896e-05, %v385_v36  ;;  %v714_v39 = vcvt.f32.s32 %v415_v63  ;;  %v712_v6 = vand.u32 2147483647, %v415_v63  ;;  %v722_v12 = vcvt.f32.s32 %v416_v1 }
  0x68   : > { %v1230_v7 = vmul.f32 %v382_v59, %v382_v59  ;;  %v451_v13 = vsub.f32 %v637_v60, %v245_v58  ;;  %v717_v16 = vand.u32 2147483648, %v415_v63  ;;  %v720_v18 = vand.u32 2147483647, %v416_v1 }
  0x69   : > { %v715_v14 = vcvt.s32.f32 %v714_v39  ;;  %v452_v51 = vsub.f32 %v638_v8, %v246_v61  ;;  %v316_v20 = vadd.f32 0.041659776, %v314_v3  ;;  %v351_v0 = vadd.f32 -0.0013858787, %v349_v4 }
  0x6a   : > { %v386_v11 = vmul.f32 -2.197276e-07, %v1230_v7  ;;  %v723_v23 = vcvt.s32.f32 %v722_v12  ;;  %v280_v26 = vmul.f32 %v278_v62, %v1165_v41  ;;  %v352_v28 = vadd.f32 -0.0013858787, %v350_v5 }
  0x6b   : > { %v716_v29 = vand.u32 2147483647, %v715_v14  ;;  %v725_v30 = vand.u32 2147483648, %v416_v1  ;;  %v389_v32 = vmul.f32 %v387_v10, %v1216_v44  ;;  %vm1237_vm8 = vcmp.lt.f32.partialorder %v712_v6, 8388608.0 }
  0x6c   : > { %v388_v22 = vadd.f32 2.4202896e-05, %v386_v11  ;;  %v724_v35 = vand.u32 2147483647, %v723_v23  ;;  %v1242_v24 = vsub.f32 %v451_v13, %v1098_v15  ;;  %v317_v37 = vmul.f32 %v315_v9, %v1172_v47 }
  0x6d   : > { %v718_v38 = vor.u32 %v717_v16, %v716_v29  ;;  %vm1245_vm9 = vcmp.lt.f32.partialorder %v720_v18, 8388608.0  ;;  %v1250_v27 = vsub.f32 %v452_v51, %v1102_v17  ;;  %v353_v42 = vmul.f32 %v351_v0, %v1202_v19 }
  0x6e   : > { %v390_v43 = vmul.f32 %v388_v22, %v1230_v7  ;;  %v726_v45 = vor.u32 %v725_v30, %v724_v35  ;;  %v455_v46 = vmul.f32 0.15915494, %v1242_v24  ;;  %v281_v34 = vadd.f32 -0.49999422, %v279_v2 }
  0x6f   : > { %v282_v15 = vadd.f32 -0.49999422, %v280_v26  ;;  %v719_v48 = vsel %vm1237_vm8, %v718_v38, %v415_v63  ;;  %v456_v49 = vmul.f32 0.15915494, %v1250_v27  ;;  %v354_v50 = vmul.f32 %v352_v28, %v1204_v21 }
  0x70   : > { %v391_v52 = vadd.f32 -0.0013858787, %v389_v32  ;;  %v727_v17 = vsel %vm1245_vm9, %v726_v45, %v416_v1  ;;  %v419_v53 = vmul.f32 6.2831855, %v719_v48  ;;  %v318_v54 = vmul.f32 %v316_v20, %v1179_v55 }
  0x71   : > { %v319_v25 = vadd.f32 -0.49999422, %v317_v37  ;;  %v420_v36 = vmul.f32 6.2831855, %v727_v17  ;;  %v730_v58 = vcvt.f32.s32 %v455_v46  ;;  %v355_v59 = vadd.f32 0.041659776, %v353_v42 }
  0x72   : > { %v392_v60 = vadd.f32 -0.0013858787, %v390_v43  ;;  %v421_v61 = vsub.f32 %v413_v56, %v419_v53  ;;  %v728_v62 = vand.u32 2147483647, %v455_v46  ;;  %v733_v3 = vand.u32 2147483648, %v455_v46 }
  0x73   : > { %v422_v2 = vsub.f32 %v414_v57, %v420_v36  ;;  %v731_v63 = vcvt.s32.f32 %v730_v58  ;;  %v738_v4 = vcvt.f32.s32 %v456_v49  ;;  %v356_v8 = vadd.f32 0.041659776, %v354_v50 }
  0x74   : > { %v393_v9 = vmul.f32 %v391_v52, %v1216_v44  ;;  %v1263_v5 = vmul.f32 %v421_v61, %v421_v61  ;;  %v736_v1 = vand.u32 2147483647, %v456_v49  ;;  %v741_v6 = vand.u32 2147483648, %v456_v49 }
  0x75   : > { %v1265_v10 = vmul.f32 %v422_v2, %v422_v2  ;;  %v732_v39 = vand.u32 2147483647, %v731_v63  ;;  %v739_v11 = vcvt.s32.f32 %v738_v4  ;;  %v320_v12 = vadd.f32 -0.49999422, %v318_v54 }
  0x76   : > { %v394_v13 = vmul.f32 %v392_v60, %v1230_v7  ;;  %v425_v56 = vmul.f32 -2.197276e-07, %v1263_v5  ;;  %vm729_vm10 = vcmp.lt.f32.partialorder %v728_v62, 8388608.0  ;;  %v357_v57 = vmul.f32 %v355_v59, %v1202_v19 }
  0x77   : > { %v426_v14 = vmul.f32 -2.197276e-07, %v1265_v10  ;;  %v734_v16 = vor.u32 %v733_v3, %v732_v39  ;;  %v740_v18 = vand.u32 2147483647, %v739_v11  ;;  %v395_v51 = vadd.f32 0.041659776, %v393_v9 }
  0x78   : > { %v427_v20 = vadd.f32 2.4202896e-05, %v425_v56  ;;  %vm737_vm11 = vcmp.lt.f32.partialorder %v736_v1, 8388608.0  ;;  %v358_v0 = vmul.f32 %v356_v8, %v1204_v21  ;;  %v283_v28 = vmul.f32 %v281_v34, %v1158_v31 }
  0x79   : > { %v428_v22 = vadd.f32 2.4202896e-05, %v426_v14  ;;  %v735_v23 = vsel %vm729_vm10, %v734_v16, %v455_v46  ;;  %v742_v26 = vor.u32 %v741_v6, %v740_v18  ;;  %v396_v29 = vadd.f32 0.041659776, %v394_v13 }
  0x7a   : > { %v429_v30 = vmul.f32 %v427_v20, %v1263_v5  ;;  %v459_v32 = vmul.f32 6.2831855, %v735_v23  ;;  %v321_v33 = vmul.f32 %v319_v25, %v1172_v47  ;;  %v359_v35 = vadd.f32 -0.49999422, %v357_v57 }
  0x7b   : > { %v430_v37 = vmul.f32 %v428_v22, %v1265_v10  ;;  %v743_v38 = vsel %vm737_vm11, %v742_v26, %v456_v49  ;;  %v397_v40 = vmul.f32 %v395_v51, %v1216_v44  ;;  %v284_v46 = vmul.f32 %v282_v15, %v1165_v41 }
  0x7c   : > { %v431_v42 = vadd.f32 -0.0013858787, %v429_v30  ;;  %v460_v43 = vmul.f32 6.2831855, %v743_v38  ;;  %v461_v45 = vsub.f32 %v1242_v24, %v459_v32  ;;  %v322_v31 = vmul.f32 %v320_v12, %v1179_v55 }
  0x7d   : > { %v360_v34 = vadd.f32 -0.49999422, %v358_v0  ;;  %v432_v48 = vadd.f32 -0.0013858787, %v430_v37  ;;  %v398_v50 = vmul.f32 %v396_v29, %v1230_v7  ;;  %v285_v49 = vadd.f32 0.9999992, %v283_v28 }
  0x7e   : > { %v433_v47 = vmul.f32 %v431_v42, %v1263_v5  ;;  %v462_v52 = vsub.f32 %v1250_v27, %v460_v43  ;;  %v463_v17 = vmul.f32 %v461_v45, %v461_v45  ;;  %v323_v53 = vadd.f32 0.9999992, %v321_v33 }
  0x7f   : > { %v361_v54 = vmul.f32 %v359_v35, %v1202_v19  ;;  %v434_v25 = vmul.f32 %v432_v48, %v1265_v10  ;;  %v399_v24 = vadd.f32 -0.49999422, %v397_v40  ;;  %v286_v55 = vadd.f32 0.9999992, %v284_v46 }
  0x80   : > { %v435_v36 = vadd.f32 0.041659776, %v433_v47  ;;  %v464_v41 = vmul.f32 %v462_v52, %v462_v52  ;;  %v465_v15 = vmul.f32 -2.197276e-07, %v463_v17  ;;  %v324_v58 = vadd.f32 0.9999992, %v322_v31 }
  0x81   : > { %v362_v59 = vmul.f32 %v360_v34, %v1204_v21  ;;  %v436_v60 = vadd.f32 0.041659776, %v434_v25  ;;  %v400_v61 = vadd.f32 -0.49999422, %v398_v50  ;;  %v325_v63 = vadd.f32 %v323_v53, %v285_v49 }
  0x82   : > { %v437_v62 = vmul.f32 %v435_v36, %v1263_v5  ;;  %v466_v27 = vmul.f32 -2.197276e-07, %v464_v41  ;;  %v467_v2 = vadd.f32 2.4202896e-05, %v465_v15  ;;  %v363_v3 = vadd.f32 0.9999992, %v361_v54 }
  0x83   : > { %v438_v19 = vmul.f32 %v436_v60, %v1265_v10  ;;  %v401_v4 = vmul.f32 %v399_v24, %v1216_v44  ;;  %v326_v39 = vadd.f32 %v324_v58, %v286_v55  ;;  %v364_v11 = vadd.f32 0.9999992, %v362_v59 }
  0x84   : > { %v439_v8 = vadd.f32 -0.49999422, %v437_v62  ;;  %v468_v9 = vadd.f32 2.4202896e-05, %v466_v27  ;;  %v469_v1 = vmul.f32 %v467_v2, %v463_v17  ;;  %v402_v6 = vmul.f32 %v400_v61, %v1230_v7 }
  0x85   : > { %v440_v21 = vadd.f32 -0.49999422, %v438_v19  ;;  %v365_v56 = vadd.f32 %v363_v3, %v325_v63  ;;  %v403_v57 = vadd.f32 0.9999992, %v401_v4  ;;  %v366_v51 = vadd.f32 %v364_v11, %v326_v39 }
  0x86   : > { %v470_v12 = vmul.f32 %v468_v9, %v464_v41  ;;  %v471_v13 = vadd.f32 -0.0013858787, %v469_v1  ;;  %v441_v14 = vmul.f32 %v439_v8, %v1263_v5  ;;  %v404_v20 = vadd.f32 0.9999992, %v402_v6 }
  0x87   : > { %v442_v44 = vmul.f32 %v440_v21, %v1265_v10  ;;  %v405_v23 = vadd.f32 %v403_v57, %v365_v56 }
  0x88   : > { %v472_v16 = vadd.f32 -0.0013858787, %v470_v12  ;;  %v473_v18 = vmul.f32 %v471_v13, %v463_v17  ;;  %v443_v26 = vadd.f32 0.9999992, %v441_v14  ;;  %v406_v29 = vadd.f32 %v404_v20, %v366_v51 }
  0x89   : > { %v444_v30 = vadd.f32 0.9999992, %v442_v44 }
  0x8a   : > { %v474_v0 = vmul.f32 %v472_v16, %v464_v41  ;;  %v475_v22 = vadd.f32 0.041659776, %v473_v18  ;;  %v445_v35 = vadd.f32 %v443_v26, %v405_v23 }
  0x8b   : > { %v446_v38 = vadd.f32 %v444_v30, %v406_v29 }
  0x8c   : > { %v476_v7 = vadd.f32 0.041659776, %v474_v0  ;;  %v477_v28 = vmul.f32 %v475_v22, %v463_v17 }
  0x8e   : > { %v478_v32 = vmul.f32 %v476_v7, %v464_v41  ;;  %v479_v33 = vadd.f32 -0.49999422, %v477_v28 }
  0x90   : > { %v480_v5 = vadd.f32 -0.49999422, %v478_v32  ;;  %v481_v37 = vmul.f32 %v479_v33, %v463_v17 }
  0x92   : > { %v482_v40 = vmul.f32 %v480_v5, %v464_v41  ;;  %v483_v42 = vadd.f32 0.9999992, %v481_v37 }
  0x94   : > { %v484_v10 = vadd.f32 0.9999992, %v482_v40  ;;  %v485_v43 = vadd.f32 %v483_v42, %v445_v35 }
  0x96   : > { %v486_v45 = vadd.f32 %v484_v10, %v446_v38  ;;  %v487_v46 = vmul.f32 0.16666667, %v485_v43 }
  0x98   : > { %v488_v31 = vmul.f32 0.16666667, %v486_v45  ;;  %489 = vst [vmem:[%s203_s3] sm:$0xff] %v487_v46 }
  0x9a   : > { %490 = vst [vmem:[%s203_s3 + $0x8] sm:$0xff] %v488_v31 }
  0x9b   : > { %873 = shalt.err (!%p870_p5)
}
  0x9c   : > { %s874_s8 = scalar_lea.hbm %s1297_s22, 256  ;;  %s878_s28 = scalar_lea.hbm %s1349_s2, 512 }
  0x9d   : > { %p875_p10 = scmp.ne.s32.totalorder %s1297_s22, %s874_s8  ;;  %p879_p0 = scmp.lt.s32.totalorder %s1297_s22, %s1349_s2 }
  0x9e   : > { %p880_p4 = scmp.lt.s32.totalorder %s878_s28, %s874_s8 }
  0x9f   : > { %p876_p11 = pnand %p875_p10, %p1016_p8 }
  0xa0   : > { %p881_p6 = por %p880_p4, %p879_p0 }
  0xa1   : > { %p877_p1 = pneg %p876_p11 }
  0xa3   : > { %p882_p3 = pnand %p881_p6, %p877_p1 }
  0xa5   : > { %885 = shalt.err (!%p882_p3)
}
  0xa6   : > { %s951_s30 = smov 128   ;;  %s952_s17 = smov 8  }
  0xa7   : > { %750 = dma.vmem_to_hbm [thread:$0]  (%p1016_p8), %s1299_s4, 256, %s1297_s22, %s492_s24, %s951_s30, %s951_s30, %s952_s17  }
  0xa8 PF: > { %s523_s3 = sand.u32 1, %s924_s9   ;;  %p1372_p7 = scmp.ne.s32.totalorder %s1353_s21, 0 }
  0xa9   : > { %p1373_p9 = scmp.ge.s32.totalorder %s944_s14, 2  ;;  %s524_s6 = scalar_lea.sflag [#allocation4], %s523_s3 }
  0xab   : > { %p761_p12 = pnand %p1373_p9, %p1372_p7 }
  0xad   : > { %p762_p13 = pneg %p761_p12 }
  0xaf   : > { %919 = dma.done.wait (%p762_p13), %s524_s6, 256  }
  0xb0   : > { %921 = vsyncadd (%p762_p13), %s524_s6, 4294967040  ;;  %s19_s14 = sadd.s32 1, %s944_s14   ;;  %s1374_s9 = smov %s928_s10 }
  0xb1   : > { %p16_p2 = scmp.ge.s32.totalorder %s19_s14, 4   ;;  %s1375_s10 = smov %s932_s11 }
  0xb2   : > { %s1376_s11 = smov %s1056_s15  ;;  %s1377_s12 = smov %s940_s13 }
  0xb3   : > { %s1378_s13 = smov %s1380_s25  ;;  %18 = sbr.rel (!%p16_p2) target bundleno = 7 (0x7), region = 84 }
  0xb8   :  { %529 = vsyncpa [#allocation3], 1 }
  0xb9   :  { %531 = vsyncpa [#allocation3 + $0x1], 1 }
  0xba   :  { %532 = vsyncpa [#allocation4], 1 }
  0xbb   :  { %534 = vsyncpa [#allocation4 + $0x1], 1 }
  0xbc   :  { %535 = vsyncpa [#allocation5], 1 }
  0xbd   :  { %537 = vsyncpa [#allocation5 + $0x1], 1 }

</bundles_post_ra>
